<compile_context>
chip_gen: v7x
topology: tpu7x:2x2x1
jax: 0.10.0
libtpu: 0.0.40
codegen_flags: <defaults>
</compile_context>

<pallas_src>
import functools
import math

import jax
import jax.numpy as jnp
from jax.experimental import pallas as pl
from jax.experimental.pallas import tpu as pltpu

_VMEM_LIMIT = 48 * 1024 * 1024  # explicit scoped-VMEM budget (safe on v5e/v6e/v7x)


def _round_up(x, m):
    return (x + m - 1) // m * m


def _largest_tile(dim, max_tile, quantum):
    """Largest multiple of `quantum` that divides `dim` and is <= max_tile."""
    best = quantum
    for t in range(quantum, min(dim, max_tile) + 1, quantum):
        if dim % t == 0:
            best = t
    return best


# ----------------------------------------------------------------------------
# Tiled matmul + bias (+ fused SiLU in/out, + fused residual add)
# ----------------------------------------------------------------------------
def _mm_kernel(*refs, act_in, act_out, has_res):
    if has_res:
        x_ref, w_ref, b_ref, res_ref, o_ref, acc_ref = refs
    else:
        x_ref, w_ref, b_ref, o_ref, acc_ref = refs

    k = pl.program_id(2)

    @pl.when(k == 0)
    def _():
        acc_ref[...] = jnp.zeros(acc_ref.shape, acc_ref.dtype)

    x = x_ref[...]
    if act_in == "silu":
        x = x * jax.nn.sigmoid(x)
    acc_ref[...] += jnp.dot(
        x.astype(jnp.bfloat16),
        w_ref[...].astype(jnp.bfloat16),
        preferred_element_type=jnp.float32,
    )

    @pl.when(k == pl.num_programs(2) - 1)
    def _():
        y = acc_ref[...] + b_ref[...]
        if act_out == "silu":
            y = y * jax.nn.sigmoid(y)
        if has_res:
            y = y + res_ref[...]
        o_ref[...] = y


def matmul_bias(x, w, b, act_in="none", act_out="none", residual=None):
    """(M,K) @ (K,N) + b, optional fused SiLU on input/output, optional fused residual add."""
    x = x.astype(jnp.float32)
    w = w.astype(jnp.float32)
    b = b.astype(jnp.float32)
    M, K = x.shape
    N = w.shape[1]

    # Tile sizes (lane dims padded to multiples of 128).
    if M >= 256:
        TM = 256
        Mp = _round_up(M, TM)
    else:
        TM = _round_up(M, 8)
        Mp = TM
    Kp = _round_up(K, 128)
    TK = _largest_tile(Kp, 512, 128)
    Np = _round_up(N, 128)
    TN = _largest_tile(Np, 256, 128)

    xp = jnp.pad(x, ((0, Mp - M), (0, Kp - K)))
    wp = jnp.pad(w, ((0, Kp - K), (0, Np - N)))
    bp = jnp.pad(b.reshape(1, N), ((0, 0), (0, Np - N)))

    ins = [xp, wp, bp]
    in_specs = [
        pl.BlockSpec((TM, TK), lambda i, j, k: (i, k)),
        pl.BlockSpec((TK, TN), lambda i, j, k: (k, j)),
        pl.BlockSpec((1, TN), lambda i, j, k: (0, j)),
    ]
    has_res = residual is not None
    if has_res:
        rp = jnp.pad(residual.astype(jnp.float32), ((0, Mp - M), (0, Np - N)))
        ins.append(rp)
        in_specs.append(pl.BlockSpec((TM, TN), lambda i, j, k: (i, j)))

    out = pl.pallas_call(
        functools.partial(_mm_kernel, act_in=act_in, act_out=act_out, has_res=has_res),
        out_shape=jax.ShapeDtypeStruct((Mp, Np), jnp.float32),
        grid=(Mp // TM, Np // TN, Kp // TK),
        in_specs=in_specs,
        out_specs=pl.BlockSpec((TM, TN), lambda i, j, k: (i, j)),
        scratch_shapes=[pltpu.VMEM((TM, TN), jnp.float32)],
        compiler_params=pltpu.CompilerParams(
            dimension_semantics=("parallel", "parallel", "arbitrary"),
            vmem_limit_bytes=_VMEM_LIMIT,
        ),
    )(*ins)
    if Mp != M or Np != N:
        out = out[:M, :N]
    return out


# ----------------------------------------------------------------------------
# Fused 3x3 stride-1 convolution: 9-tap accumulation from a halo-padded plane
# (no HBM im2col), bias / SiLU / residual fused in the epilogue.
# ----------------------------------------------------------------------------
def _conv3_kernel(*refs, Ho, Wo, act_out, has_res):
    if has_res:
        xp_ref, w_ref, b_ref, res_ref, o_ref = refs
    else:
        xp_ref, w_ref, b_ref, o_ref = refs

    cin = xp_ref.shape[-1]
    tn = o_ref.shape[-1]
    plane = xp_ref[0]  # (H+2, W+2, Cin), fully resident in VMEM

    acc = jnp.zeros((Ho * Wo, tn), jnp.float32)
    for dy in range(3):
        for dx in range(3):
            patch = plane[dy:dy + Ho, dx:dx + Wo, :]              # (Ho, Wo, Cin)
            patch = patch.reshape(Ho * Wo, cin).astype(jnp.bfloat16)
            wt = w_ref[dy, dx].astype(jnp.bfloat16)               # (Cin, TN)
            acc = acc + jnp.dot(patch, wt, preferred_element_type=jnp.float32)

    y = acc + b_ref[...]
    if act_out == "silu":
        y = y * jax.nn.sigmoid(y)
    if has_res:
        y = y + res_ref[0]
    o_ref[0] = y


def _conv3x3_fused(x, w, b, residual=None, act_out="none"):
    N, H, W, Cin = x.shape
    Cout = w.shape[-1]
    HW = H * W
    xp = jnp.pad(x.astype(jnp.float32), ((0, 0), (1, 1), (1, 1), (0, 0)))

    TN = 256 if (Cout > 256 and Cout % 256 == 0) else Cout
    grid = (N, Cout // TN)

    ins = [xp, w.astype(jnp.float32), b.reshape(1, Cout).astype(jnp.float32)]
    in_specs = [
        pl.BlockSpec((1, H + 2, W + 2, Cin), lambda n, j: (n, 0, 0, 0)),
        pl.BlockSpec((3, 3, Cin, TN), lambda n, j: (0, 0, 0, j)),
        pl.BlockSpec((1, TN), lambda n, j: (0, j)),
    ]
    has_res = residual is not None
    if has_res:
        ins.append(residual.reshape(N, HW, Cout).astype(jnp.float32))
        in_specs.append(pl.BlockSpec((1, HW, TN), lambda n, j: (n, 0, j)))

    out = pl.pallas_call(
        functools.partial(_conv3_kernel, Ho=H, Wo=W, act_out=act_out, has_res=has_res),
        out_shape=jax.ShapeDtypeStruct((N, HW, Cout), jnp.float32),
        grid=grid,
        in_specs=in_specs,
        out_specs=pl.BlockSpec((1, HW, TN), lambda n, j: (n, 0, j)),
        compiler_params=pltpu.CompilerParams(
            dimension_semantics=("parallel", "parallel"),
            vmem_limit_bytes=_VMEM_LIMIT,
        ),
    )(*ins)
    return out.reshape(N, H, W, Cout)


def _im2col_3x3(x, stride):
    N, H, W, C = x.shape
    xp = jnp.pad(x, ((0, 0), (1, 1), (1, 1), (0, 0)))
    Ho = (H + 2 - 3) // stride + 1
    Wo = (W + 2 - 3) // stride + 1
    cols = []
    for dy in range(3):
        for dx in range(3):
            cols.append(xp[:, dy:dy + Ho * stride:stride, dx:dx + Wo * stride:stride, :])
    return jnp.concatenate(cols, axis=-1)  # (N, Ho, Wo, 9C)


def conv3x3(x, w, b, stride=1, residual=None, act_out="none"):
    """3x3 conv, padding=1. Fused halo kernel for stride-1 / W%8==0; im2col fallback otherwise."""
    N, H, W, C = x.shape
    if stride == 1 and W % 8 == 0:
        return _conv3x3_fused(x, w, b, residual=residual, act_out=act_out)
    cols = _im2col_3x3(x, stride)
    Nb, Ho, Wo, K = cols.shape
    Cout = w.shape[-1]
    res_flat = None if residual is None else residual.reshape(Nb * Ho * Wo, Cout)
    y = matmul_bias(cols.reshape(Nb * Ho * Wo, K), w.reshape(K, Cout), b,
                    act_out=act_out, residual=res_flat)
    return y.reshape(Nb, Ho, Wo, Cout)


def conv1x1(x, w, b, act_in="none", act_out="none", residual=None):
    N, H, W, C = x.shape
    res_flat = None if residual is None else residual.reshape(N * H * W, -1)
    y = matmul_bias(x.reshape(N * H * W, C), w, b,
                    act_in=act_in, act_out=act_out, residual=res_flat)
    return y.reshape(N, H, W, -1)


# ----------------------------------------------------------------------------
# GroupNorm (+ fused broadcast time-embedding add, + fused SiLU)
# ----------------------------------------------------------------------------
def _gn_kernel(*refs, eps, inv_count, act, has_add):
    if has_add:
        x_ref, add_ref, g_ref, b_ref, oh_ref, oht_ref, o_ref = refs
    else:
        x_ref, g_ref, b_ref, oh_ref, oht_ref, o_ref = refs

    x = x_ref[0]                          # (HW, C) f32
    if has_add:
        x = x + add_ref[0]                # (1, C) per-sample broadcast add
    onehot = oh_ref[...]                  # (C, G)
    onehot_t = oht_ref[...]               # (G, C)

    # Centered statistics (everything is resident in VMEM, so two passes are cheap).
    colsum = jnp.sum(x, axis=0, keepdims=True)                                  # (1, C)
    mean_g = jnp.dot(colsum, onehot, preferred_element_type=jnp.float32) * inv_count
    mean_c = jnp.dot(mean_g, onehot_t, preferred_element_type=jnp.float32)      # (1, C)
    xc = x - mean_c
    colsumsq = jnp.sum(xc * xc, axis=0, keepdims=True)
    var_g = jnp.dot(colsumsq, onehot, preferred_element_type=jnp.float32) * inv_count
    var_c = jnp.dot(var_g, onehot_t, preferred_element_type=jnp.float32)

    y = xc * jax.lax.rsqrt(var_c + eps)
    y = y * g_ref[...] + b_ref[...]
    if act == "silu":
        y = y * jax.nn.sigmoid(y)
    o_ref[0] = y


def group_norm(x, gamma, beta, groups, act="none", add=None, eps=1e-5):
    """GroupNorm over (H, W, C/groups); optional fused per-sample (N, C) add and SiLU."""
    Nb, H, W, C = x.shape
    HW = H * W
    Cg = C // groups
    xr = x.reshape(Nb, HW, C).astype(jnp.float32)
    onehot = (jnp.arange(C)[:, None] // Cg == jnp.arange(groups)[None, :]).astype(jnp.float32)

    has_add = add is not None
    ins = [xr]
    in_specs = [pl.BlockSpec((1, HW, C), lambda n: (n, 0, 0))]
    if has_add:
        ins.append(add.reshape(Nb, 1, C).astype(jnp.float32))
        in_specs.append(pl.BlockSpec((1, 1, C), lambda n: (n, 0, 0)))
    ins += [gamma.reshape(1, C).astype(jnp.float32),
            beta.reshape(1, C).astype(jnp.float32),
            onehot, onehot.T]
    in_specs += [pl.BlockSpec((1, C), lambda n: (0, 0)),
                 pl.BlockSpec((1, C), lambda n: (0, 0)),
                 pl.BlockSpec((C, groups), lambda n: (0, 0)),
                 pl.BlockSpec((groups, C), lambda n: (0, 0))]

    out = pl.pallas_call(
        functools.partial(_gn_kernel, eps=eps, inv_count=1.0 / float(HW * Cg),
                          act=act, has_add=has_add),
        out_shape=jax.ShapeDtypeStruct((Nb, HW, C), jnp.float32),
        grid=(Nb,),
        in_specs=in_specs,
        out_specs=pl.BlockSpec((1, HW, C), lambda n: (n, 0, 0)),
        compiler_params=pltpu.CompilerParams(
            dimension_semantics=("parallel",),
            vmem_limit_bytes=_VMEM_LIMIT,
        ),
    )(*ins)
    return out.reshape(Nb, H, W, C)


# ----------------------------------------------------------------------------
# Flash-style attention: KV-axis grid + online softmax
# ----------------------------------------------------------------------------
def _flash_attn_kernel(q_ref, k_ref, v_ref, o_ref, m_sc, l_sc, acc_sc, *, scale):
    kv = pl.program_id(2)

    @pl.when(kv == 0)
    def _():
        m_sc[...] = jnp.full(m_sc.shape, -jnp.inf, m_sc.dtype)
        l_sc[...] = jnp.zeros(l_sc.shape, l_sc.dtype)
        acc_sc[...] = jnp.zeros(acc_sc.shape, acc_sc.dtype)

    q = q_ref[0].astype(jnp.bfloat16)
    k = k_ref[0].astype(jnp.bfloat16)
    s = jax.lax.dot_general(q, k, (((1,), (1,)), ((), ())),
                            preferred_element_type=jnp.float32) * scale

    m_prev = m_sc[...]
    m_new = jnp.maximum(m_prev, jnp.max(s, axis=-1, keepdims=True))
    alpha = jnp.exp(m_prev - m_new)
    p = jnp.exp(s - m_new)
    l_sc[...] = alpha * l_sc[...] + jnp.sum(p, axis=-1, keepdims=True)
    acc_sc[...] = alpha * acc_sc[...] + jnp.dot(
        p.astype(jnp.bfloat16), v_ref[0].astype(jnp.bfloat16),
        preferred_element_type=jnp.float32)
    m_sc[...] = m_new

    @pl.when(kv == pl.num_programs(2) - 1)
    def _():
        o_ref[0] = acc_sc[...] * pl.reciprocal(l_sc[...], approx=True)


def attention(q, k, v):
    """q, k, v: (N, HW, C) -> softmax(q k^T / sqrt(C)) v, flash-style over KV tiles."""
    N, HW, C = q.shape
    scale = 1.0 / math.sqrt(C)
    if HW % 128 == 0:
        T = 128
    elif HW % 64 == 0:
        T = 64
    else:
        T = HW
    grid = (N, HW // T, HW // T)
    return pl.pallas_call(
        functools.partial(_flash_attn_kernel, scale=scale),
        out_shape=jax.ShapeDtypeStruct((N, HW, C), jnp.float32),
        grid=grid,
        in_specs=[
            pl.BlockSpec((1, T, C), lambda n, qi, kv: (n, qi, 0)),
            pl.BlockSpec((1, T, C), lambda n, qi, kv: (n, kv, 0)),
            pl.BlockSpec((1, T, C), lambda n, qi, kv: (n, kv, 0)),
        ],
        out_specs=pl.BlockSpec((1, T, C), lambda n, qi, kv: (n, qi, 0)),
        scratch_shapes=[
            pltpu.VMEM((T, 1), jnp.float32),
            pltpu.VMEM((T, 1), jnp.float32),
            pltpu.VMEM((T, C), jnp.float32),
        ],
        compiler_params=pltpu.CompilerParams(
            dimension_semantics=("parallel", "parallel", "arbitrary"),
            vmem_limit_bytes=_VMEM_LIMIT,
        ),
    )(q.astype(jnp.float32), k.astype(jnp.float32), v.astype(jnp.float32))


# ----------------------------------------------------------------------------
# Parameter construction (deterministic, synthetic init)
# ----------------------------------------------------------------------------
def _init_linear(key, fan_in, fan_out):
    kw, kb = jax.random.split(key)
    w = jax.random.normal(kw, (fan_in, fan_out), jnp.float32) / math.sqrt(fan_in)
    b = jax.random.normal(kb, (fan_out,), jnp.float32) * 0.01
    return w, b


def _init_conv3(key, cin, cout):
    kw, kb = jax.random.split(key)
    w = jax.random.normal(kw, (3, 3, cin, cout), jnp.float32) / math.sqrt(9 * cin)
    b = jax.random.normal(kb, (cout,), jnp.float32) * 0.01
    return w, b


def _res_params(key, temb_dim, C, att):
    ks = jax.random.split(key, 8)
    groups = 8 if C % 8 == 0 else 1
    p = {"groups": groups, "att": None,
         "gn1_g": jnp.ones((C,), jnp.float32), "gn1_b": jnp.zeros((C,), jnp.float32),
         "gn2_g": jnp.ones((C,), jnp.float32), "gn2_b": jnp.zeros((C,), jnp.float32)}
    p["conv1_w"], p["conv1_b"] = _init_conv3(ks[0], C, C)
    p["temb_w"], p["temb_b"] = _init_linear(ks[1], temb_dim, C)
    p["conv2_w"], p["conv2_b"] = _init_conv3(ks[2], C, C)
    if att:
        a = {"groups": groups,
             "gn_g": jnp.ones((C,), jnp.float32), "gn_b": jnp.zeros((C,), jnp.float32)}
        a["wq"], a["bq"] = _init_linear(ks[3], C, C)
        a["wk"], a["bk"] = _init_linear(ks[4], C, C)
        a["wv"], a["bv"] = _init_linear(ks[5], C, C)
        a["wo"], a["bo"] = _init_linear(ks[6], C, C)
        p["att"] = a
    return p


def build_unet_params(key, hidden_dim, num_sampling, ch, pos):
    keys = iter(jax.random.split(key, 128))
    nk = lambda: next(keys)
    temb_dim = pos * 4
    P = {"pos": pos}
    P["block0_w"], P["block0_b"] = _init_linear(nk(), ch, hidden_dim)
    P["temb_w1"], P["temb_b1"] = _init_linear(nk(), pos, temb_dim)
    P["temb_w2"], P["temb_b2"] = _init_linear(nk(), temb_dim, temb_dim)

    att = True
    block1 = []
    for i in range(num_sampling):
        att = not att
        C = hidden_dim * 2 ** i
        block1.append(("res", _res_params(nk(), temb_dim, C, att)))
        block1.append(("res", _res_params(nk(), temb_dim, C, att)))
        w, b = _init_conv3(nk(), C, 2 * C)
        block1.append(("down", {"w": w, "b": b}))
    P["block1"] = block1

    P["block2"] = [("res", _res_params(nk(), temb_dim, hidden_dim * 2 ** num_sampling, False))]

    block3 = []
    for i in range(num_sampling):
        att = not att
        C = hidden_dim * 2 ** (num_sampling - i)
        block3.append(("res", _res_params(nk(), temb_dim, C, att)))
        w, b = _init_conv3(nk(), C, C // 2)
        block3.append(("up", {"w": w, "b": b}))
        w, b = _init_conv3(nk(), C, C // 2)
        block3.append(("conv", {"w": w, "b": b}))
    P["block3"] = block3

    P["block4_w"], P["block4_b"] = _init_linear(nk(), hidden_dim, ch)
    return P


# ----------------------------------------------------------------------------
# Forward pass
# ----------------------------------------------------------------------------
def _time_embedding(P, t):
    pos = P["pos"]
    half = pos // 2
    freqs = jnp.exp(-math.log(10000.0) * jnp.arange(half, dtype=jnp.float32) / half)
    args = t.astype(jnp.float32)[:, None] * freqs[None, :]
    emb = jnp.concatenate([jnp.sin(args), jnp.cos(args)], axis=-1)       # (N, pos)
    h = matmul_bias(emb, P["temb_w1"], P["temb_b1"], act_out="silu")
    return matmul_bias(h, P["temb_w2"], P["temb_b2"])                    # (N, pos*4)


def _attn_block(x, p):
    N, H, W, C = x.shape
    h = group_norm(x, p["gn_g"], p["gn_b"], p["groups"])
    hf = h.reshape(N * H * W, C)
    q = matmul_bias(hf, p["wq"], p["bq"]).reshape(N, H * W, C)
    k = matmul_bias(hf, p["wk"], p["bk"]).reshape(N, H * W, C)
    v = matmul_bias(hf, p["wv"], p["bv"]).reshape(N, H * W, C)
    a = attention(q, k, v).reshape(N * H * W, C)
    # output projection with the residual add fused into the matmul epilogue
    out = matmul_bias(a, p["wo"], p["bo"], residual=x.reshape(N * H * W, C))
    return out.reshape(N, H, W, C)


def _resnet_block(x, temb, p):
    h = group_norm(x, p["gn1_g"], p["gn1_b"], p["groups"], act="silu")
    h = conv3x3(h, p["conv1_w"], p["conv1_b"])
    tproj = matmul_bias(temb, p["temb_w"], p["temb_b"], act_in="silu")   # (N, C)
    # time-embedding broadcast add fused into GroupNorm2
    h = group_norm(h, p["gn2_g"], p["gn2_b"], p["groups"], act="silu", add=tproj)
    # residual add fused into conv2's epilogue
    x = conv3x3(h, p["conv2_w"], p["conv2_b"], residual=x)
    if p["att"] is not None:
        x = _attn_block(x, p["att"])
    return x


def _upsample_nearest2x(x):
    N, H, W, C = x.shape
    x = jnp.broadcast_to(x[:, :, None, :, None, :], (N, H, 2, W, 2, C))
    return x.reshape(N, 2 * H, 2 * W, C)


def unet_forward(P, x_nchw, t):
    x = jnp.transpose(x_nchw, (0, 2, 3, 1)).astype(jnp.float32)          # NCHW -> NHWC
    temb = _time_embedding(P, t)

    # block0: Conv2d(ch, hidden, 1) + SiLU
    x = conv1x1(x, P["block0_w"], P["block0_b"], act_out="silu")

    xs = []
    for kind, p in P["block1"]:
        if kind == "down":
            xs.append(x)
            x = conv3x3(x, p["w"], p["b"], stride=2)
        else:
            x = _resnet_block(x, temb, p)

    for _, p in P["block2"]:
        x = _resnet_block(x, temb, p)

    for kind, p in P["block3"]:
        if kind == "res":
            x = _resnet_block(x, temb, p)
        elif kind == "up":
            x = _upsample_nearest2x(x)
            x = conv3x3(x, p["w"], p["b"])
            x = jnp.concatenate([x, xs.pop()], axis=-1)                  # skip-concat (channel)
        else:  # "conv" (ConV)
            x = conv3x3(x, p["w"], p["b"])

    # block4: SiLU + Conv2d(hidden, ch, 1)
    x = conv1x1(x, P["block4_w"], P["block4_b"], act_in="silu")
    return jnp.transpose(x, (0, 3, 1, 2))                                # NHWC -> NCHW


# ----------------------------------------------------------------------------
if __name__ == "__main__":
    hidden_dim, num_sampling, ch, pos = 32, 2, 4, 8
    B, H, W = 2, 16, 16

    key = jax.random.PRNGKey(0)
    kp, kx, kt = jax.random.split(key, 3)
    params = build_unet_params(kp, hidden_dim, num_sampling, ch, pos)

    x = jax.random.normal(kx, (B, ch, H, W), jnp.float32)                # NCHW like PyTorch
    t = jax.random.randint(kt, (B,), 0, 1000)

    out = unet_forward(params, x, t)
    out = jax.block_until_ready(out)
    assert out.shape == (B, ch, H, W), out.shape
    assert jnp.all(jnp.isfinite(out))
    print("KERNEL_OK")
</pallas_src>

<mosaic_0001>
module attributes {stable_mosaic.version = 11 : i64} {
  func.func @_mm_kernel(%arg0: i32, %arg1: i32, %arg2: i32, %arg3: memref<8x128xf32, #tpu.memory_space<vmem>>, %arg4: memref<128x128xf32, #tpu.memory_space<vmem>>, %arg5: memref<1x128xf32, #tpu.memory_space<vmem>>, %arg6: memref<8x128xf32, #tpu.memory_space<vmem>>, %arg7: memref<8x128xf32, #tpu.memory_space<vmem>>) attributes {dimension_semantics = [#tpu.dimension_semantics<parallel>, #tpu.dimension_semantics<parallel>, #tpu.dimension_semantics<arbitrary>], iteration_bounds = array<i64: 1, 1, 1>, scalar_prefetch = 0 : i64, scratch_operands = 1 : i64, tpu.core_type = #tpu.core_type<tc>, window_params = [{transform_indices = @transform_0, window_bounds = array<i64: 8, 128>}, {transform_indices = @transform_1, window_bounds = array<i64: 128, 128>}, {transform_indices = @transform_2, window_bounds = array<i64: 1, 128>}, {transform_indices = @transform_3, window_bounds = array<i64: 8, 128>}]} {
    %c0_i32 = arith.constant 0 : i32
    %0 = arith.cmpi eq, %arg2, %c0_i32 : i32
    %1 = arith.extui %0 : i1 to i32
    %c0_i32_0 = arith.constant 0 : i32
    %2 = arith.cmpi ne, %1, %c0_i32_0 : i32
    scf.if %2 {
      %cst_10 = arith.constant 0.000000e+00 : f32
      %14 = vector.broadcast %cst_10 : f32 to vector<8x128xf32>
      %c0_11 = arith.constant 0 : index
      %c0_12 = arith.constant 0 : index
      %15 = vector.load %arg7[%c0_11, %c0_12] : memref<8x128xf32, #tpu.memory_space<vmem>>, vector<8x128xf32>
      tpu.vector_store %arg7[%c0_11, %c0_12], %14 {strides = array<i32>} : memref<8x128xf32, #tpu.memory_space<vmem>>, vector<8x128xf32>,
    } else {
    }
    %c0 = arith.constant 0 : index
    %c0_1 = arith.constant 0 : index
    %3 = vector.load %arg3[%c0, %c0_1] : memref<8x128xf32, #tpu.memory_space<vmem>>, vector<8x128xf32>
    %c0_2 = arith.constant 0 : index
    %c0_3 = arith.constant 0 : index
    %4 = vector.load %arg7[%c0_2, %c0_3] : memref<8x128xf32, #tpu.memory_space<vmem>>, vector<8x128xf32>
    %5 = arith.truncf %3 : vector<8x128xf32> to vector<8x128xbf16>
    %c0_4 = arith.constant 0 : index
    %c0_5 = arith.constant 0 : index
    %6 = vector.load %arg4[%c0_4, %c0_5] : memref<128x128xf32, #tpu.memory_space<vmem>>, vector<128x128xf32>
    %7 = arith.truncf %6 : vector<128x128xf32> to vector<128x128xbf16>
    %cst = arith.constant dense<0.000000e+00> : vector<8x128xf32>
    %8 = tpu.matmul %5, %7, %cst {dimension_numbers = #tpu.dot_dimension_numbers<[1], [0], [0], [1], [0, 0, 1, 1], [], []>} : vector<8x128xbf16>, vector<128x128xbf16>, vector<8x128xf32> -> vector<8x128xf32>
    %9 = arith.addf %4, %8 : vector<8x128xf32>
    %c0_6 = arith.constant 0 : index
    %c0_7 = arith.constant 0 : index
    %10 = vector.load %arg7[%c0_6, %c0_7] : memref<8x128xf32, #tpu.memory_space<vmem>>, vector<8x128xf32>
    tpu.vector_store %arg7[%c0_6, %c0_7], %9 {strides = array<i32>} : memref<8x128xf32, #tpu.memory_space<vmem>>, vector<8x128xf32>,
    %c0_i32_8 = arith.constant 0 : i32
    %11 = arith.cmpi eq, %arg2, %c0_i32_8 : i32
    %12 = arith.extui %11 : i1 to i32
    %c0_i32_9 = arith.constant 0 : i32
    %13 = arith.cmpi ne, %12, %c0_i32_9 : i32
    scf.if %13 {
      %c0_10 = arith.constant 0 : index
      %c0_11 = arith.constant 0 : index
      %14 = vector.load %arg7[%c0_10, %c0_11] : memref<8x128xf32, #tpu.memory_space<vmem>>, vector<8x128xf32>
      %c0_12 = arith.constant 0 : index
      %c0_13 = arith.constant 0 : index
      %15 = vector.load %arg5[%c0_12, %c0_13] : memref<1x128xf32, #tpu.memory_space<vmem>>, vector<1x128xf32>
      %16 = vector.broadcast %15 : vector<1x128xf32> to vector<8x128xf32>
      %17 = arith.addf %14, %16 : vector<8x128xf32>
      %18 = arith.negf %17 : vector<8x128xf32>
      %19 = math.exp %18 : vector<8x128xf32>
      %cst_14 = arith.constant 1.000000e+00 : f32
      %20 = vector.broadcast %cst_14 : f32 to vector<8x128xf32>
      %21 = arith.addf %20, %19 : vector<8x128xf32>
      %22 = arith.divf %20, %21 : vector<8x128xf32>
      %23 = arith.mulf %17, %22 : vector<8x128xf32>
      %c0_15 = arith.constant 0 : index
      %c0_16 = arith.constant 0 : index
      %24 = vector.load %arg6[%c0_15, %c0_16] : memref<8x128xf32, #tpu.memory_space<vmem>>, vector<8x128xf32>
      tpu.vector_store %arg6[%c0_15, %c0_16], %23 {strides = array<i32>} : memref<8x128xf32, #tpu.memory_space<vmem>>, vector<8x128xf32>,
    } else {
    }
    return
  }
  func.func @transform_0(%arg0: i32, %arg1: i32, %arg2: i32) -> (i32, i32) {
    %c0_i32 = arith.constant 0 : i32
    return %arg0, %arg2 : i32, i32
  }
  func.func @transform_1(%arg0: i32, %arg1: i32, %arg2: i32) -> (i32, i32) {
    %c0_i32 = arith.constant 0 : i32
    return %arg2, %arg1 : i32, i32
  }
  func.func @transform_2(%arg0: i32, %arg1: i32, %arg2: i32) -> (i32, i32) {
    %c0_i32 = arith.constant 0 : i32
    %c0_i32_0 = arith.constant 0 : i32
    return %c0_i32, %arg1 : i32, i32
  }
  func.func @transform_3(%arg0: i32, %arg1: i32, %arg2: i32) -> (i32, i32) {
    %c0_i32 = arith.constant 0 : i32
    return %arg0, %arg1 : i32, i32
  }
}

</mosaic_0001>

<bundles_post_ra>
// kernel: tpu_custom_call.1
= control target key start
LH: loop header
LB: loop body
LE: loop exit
PB: predicated region body
PF: predicated region fallthrough
CT: control target
= control target key end

     0   :  { %8 = vsyncpa [#allocation4], 0  ;;  %s339_s0 = inlined_call_operand.hbm [shape: f32[8,128], index: 0, kind: input, shape index: {}]   ;;  %s340_s1 = inlined_call_operand.hbm [shape: f32[128,128], index: 1, kind: input, shape index: {}]   ;;  %s341_s2 = inlined_call_operand.vmem [shape: f32[1,128], index: 2, kind: input, shape index: {}]   ;;  %s342_s3 = inlined_call_operand.hbm [shape: f32[8,128], index: 3, kind: output, shape index: {}]  }
   0x1   :  { %9 = vsyncpa [#allocation7], 0 }
   0x2   :  { %10 = vsyncpa [#allocation5], 0  ;;  %s266_s12 = smov [#allocation3]   ;;  %s267_s14 = smov [#allocation6]  }
   0x3   :  { %s17_s13 = sshll.u32 %s266_s12, 4  ;;  %s26_s15 = sshll.u32 %s267_s14, 4  ;;  %s18_s13 = int_to_ptr.vmem [resolvable:$true] %s17_s13  ;;  %s293_s15 = int_to_ptr.vmem [resolvable:$true] %s26_s15 }
   0x4   :  { %s194_s18 = scalar_lea.hbm %s339_s0, 128 }
   0x5   :  { %p195_p0 = scmp.ne.s32.totalorder %s339_s0, %s194_s18  ;;  %p198_p1 = scmp.lt.u32.totalorder %s194_s18, %s339_s0 }
   0x7   :  { %p200_p2 = pnand %p198_p1, %p195_p0 }
   0x9   :  { %203 = shalt.err (!%p200_p2)
}
   0xa   :  { %s204_s23 = scalar_lea.vmem %s18_s13, 128  ;;  %p209_p4 = scmp.lt.s32.totalorder %s18_s13, %s18_s13 }
   0xb   :  { %p205_p3 = scmp.ne.s32.totalorder %s18_s13, %s204_s23  ;;  %p210_p5 = scmp.lt.s32.totalorder %s204_s23, %s204_s23 }
   0xd   :  { %p211_p6 = por %p210_p5, %p209_p4 }
   0xf   :  { %p212_p7 = pnand %p211_p6, %p205_p3 }
  0x11   :  { %215 = shalt.err (!%p212_p7)
}
  0x12   :  { %20 = dma.hbm_to_vmem [thread:$0]  %s339_s0, 128, %s18_s13, [#allocation4]  }
  0x13   :  { %s216_s28 = scalar_lea.hbm %s340_s1, 2048 }
  0x14   :  { %p217_p8 = scmp.ne.s32.totalorder %s340_s1, %s216_s28  ;;  %p220_p9 = scmp.lt.u32.totalorder %s216_s28, %s340_s1 }
  0x16   :  { %p222_p10 = pnand %p220_p9, %p217_p8 }
  0x18   :  { %225 = shalt.err (!%p222_p10)
}
  0x19   :  { %s226_s6 = scalar_lea.vmem %s293_s15, 2048  ;;  %p231_p12 = scmp.lt.s32.totalorder %s293_s15, %s293_s15 }
  0x1a   :  { %p227_p11 = scmp.ne.s32.totalorder %s293_s15, %s226_s6  ;;  %p232_p13 = scmp.lt.s32.totalorder %s226_s6, %s226_s6 }
  0x1c   :  { %p233_p0 = por %p232_p13, %p231_p12 }
  0x1e   :  { %p234_p1 = pnand %p233_p0, %p227_p11 }
  0x20   :  { %237 = shalt.err (!%p234_p1)
}
  0x21   :  { %s268_s0 = smov 128   ;;  %s269_s7 = smov 8  }
  0x22   :  { %32 = dma.hbm_to_vmem [thread:$0]  %s340_s1, 2048, %s293_s15, [#allocation7], %s268_s0, %s268_s0, %s269_s7  }
  0x23   :  { %260 = dma.done.wait [#allocation4], 128  }
  0x24   :  { %261 = vsyncadd [#allocation4], 4294967168 }
  0x25   :  { %262 = dma.done.wait [#allocation7], 2048  }
  0x26   :  { %263 = vsyncadd [#allocation7], 4294965248  ;;  %v270_v0 = vmov 0.0   ;;  %vm271_vm0 = vmmov 0   ;;  %v50_v1 = vld [vmem:[#allocation6] sm:$0xff]  ;;  %v51_v2 = vld [vmem:[#allocation6 + $0x8] sm:$0xff] }
  0x27   :  { %163 = vmatprep.subr.bf16.mxu0 %v270_v0  ;;  %179 = vmatprep.mubr.msk.bf16.mxu0 %vm271_vm0, %v270_v0  ;;  %v52_v3 = vld [vmem:[#allocation6 + $0x10] sm:$0xff]  ;;  %v66_v4 = vpack.c.bf16 %v51_v2, %v50_v1  ;;  %v53_v5 = vld [vmem:[#allocation6 + $0x18] sm:$0xff]  ;;  %v54_v7 = vld [vmem:[#allocation6 + $0x20] sm:$0xff]  ;;  %s272_s11 = smov [#allocation8]  }
  0x28   :  { %v67_v6 = vpack.c.bf16 %v53_v5, %v52_v3  ;;  %v55_v8 = vld [vmem:[#allocation6 + $0x28] sm:$0xff]  ;;  %v56_v10 = vld [vmem:[#allocation6 + $0x30] sm:$0xff]  ;;  %v57_v11 = vld [vmem:[#allocation6 + $0x38] sm:$0xff]  ;;  %s142_s12 = sshll.u32 %s272_s11, 4  ;;  %s143_s12 = int_to_ptr.vmem [resolvable:$true] %s142_s12 }
  0x29   :  { %164 = vmatpush3.bf16.msra.mxu0 %v66_v4  ;;  %v68_v9 = vpack.c.bf16 %v55_v8, %v54_v7  ;;  %v69_v12 = vpack.c.bf16 %v57_v11, %v56_v10  ;;  %v58_v13 = vld [vmem:[#allocation6 + $0x40] sm:$0xff]  ;;  %v59_v14 = vld [vmem:[#allocation6 + $0x48] sm:$0xff]  ;;  %v60_v16 = vld [vmem:[#allocation6 + $0x50] sm:$0xff]  ;;  %s238_s13 = scalar_lea.vmem %s143_s12, 128  ;;  %p243_p3 = scmp.lt.s32.totalorder %s143_s12, %s143_s12 }
  0x2a   :  { %165 = vmatprep.subr.bf16.mxu0 %v270_v0  ;;  %v70_v15 = vpack.c.bf16 %v59_v14, %v58_v13  ;;  %v61_v17 = vld [vmem:[#allocation6 + $0x58] sm:$0xff]  ;;  %v62_v19 = vld [vmem:[#allocation6 + $0x60] sm:$0xff]  ;;  %v63_v20 = vld [vmem:[#allocation6 + $0x68] sm:$0xff]  ;;  %p239_p2 = scmp.ne.s32.totalorder %s143_s12, %s238_s13  ;;  %p244_p4 = scmp.lt.s32.totalorder %s238_s13, %s238_s13 }
  0x2b   :  { %v71_v18 = vpack.c.bf16 %v61_v17, %v60_v16  ;;  %v72_v21 = vpack.c.bf16 %v63_v20, %v62_v19  ;;  %v64_v22 = vld [vmem:[#allocation6 + $0x70] sm:$0xff]  ;;  %v65_v23 = vld [vmem:[#allocation6 + $0x78] sm:$0xff] }
  0x2c   :  { %v73_v24 = vpack.c.bf16 %v65_v23, %v64_v22  ;;  %v47_v25 = vld [vmem:[#allocation3] sm:$0xff]  ;;  %p245_p5 = por %p244_p4, %p243_p3 }
  0x2d   :  { %166 = vmatpush3.bf16.msra.mxu0 %v67_v6  ;;  %v49_v26 = vpack.c.bf16 %v47_v25, %v47_v25  ;;  %v152_v27 = vld [vmem:[%s341_s2] ss:$0 sm:$0xff] }
  0x2e   :  { %167 = vmatprep.subr.bf16.mxu0 %v270_v0  ;;  %p246_p6 = pnand %p245_p5, %p239_p2 }
  0x31   :  { %168 = vmatpush3.bf16.msra.mxu0 %v68_v9 }
  0x32   :  { %169 = vmatprep.subr.bf16.mxu0 %v270_v0 }
  0x35   :  { %170 = vmatpush3.bf16.msra.mxu0 %v69_v12 }
  0x36   :  { %171 = vmatprep.subr.bf16.mxu0 %v270_v0 }
  0x39   :  { %172 = vmatpush3.bf16.msra.mxu0 %v70_v15 }
  0x3a   :  { %173 = vmatprep.subr.bf16.mxu0 %v270_v0 }
  0x3d   :  { %174 = vmatpush3.bf16.msra.mxu0 %v71_v18 }
  0x3e   :  { %175 = vmatprep.subr.bf16.mxu0 %v270_v0 }
  0x41   :  { %176 = vmatpush3.bf16.msra.mxu0 %v72_v21 }
  0x42   :  { %177 = vmatprep.subr.bf16.mxu0 %v270_v0 }
  0x45   :  { %178 = vmatpush3.bf16.msra.mxu0 %v73_v24 }
  0x48   :  { %180 = vmatmul.mubr.bf16.vlgmr.msra.gmra.mrb[0].mxu0 %v49_v26 }
 0x11b   :  { %v108_v28 = vpop.f32.mrb[0].mxu0 }
 0x11c   :  { %v127_v29 = vadd.f32 %v152_v27, %v108_v28  ;;  %v181_v30 = vpop.f32.mrb[1].mxu0 }
 0x11d   :  { %v111_v31 = vpop.f32.mrb[2].mxu0 }
 0x11e   :  { %v153_v32 = vmul.f32 -1.442695, %v127_v29  ;;  %v182_v33 = vpop.f32.mrb[3].mxu0 }
 0x120   :  { %190 = vpow2.f32 %v153_v32 }
 0x12a   :  { %v191_v34 = vpop.eup %190 }
 0x12b   :  { %v131_v35 = vadd.f32 1.0, %v191_v34 }
 0x12d   :  { %192 = vrcp.f32 %v131_v35 }
 0x137   :  { %v193_v36 = vpop.eup %192 }
 0x138   :  { %v134_v37 = vmul.f32 %v193_v36, %v127_v29 }
 0x13a   :  { %135 = vst [vmem:[#allocation8] sm:$0xff] %v134_v37 }
 0x13b   :  { %249 = shalt.err (!%p246_p6)
}
 0x13c   :  { %s250_s15 = scalar_lea.hbm %s342_s3, 128 }
 0x13d   :  { %p251_p7 = scmp.ne.s32.totalorder %s342_s3, %s250_s15  ;;  %p254_p8 = scmp.lt.u32.totalorder %s250_s15, %s342_s3 }
 0x13f   :  { %p256_p9 = pnand %p254_p8, %p251_p7 }
 0x141   :  { %259 = shalt.err (!%p256_p9)
}
 0x142   :  { %145 = dma.vmem_to_hbm [thread:$0]  %s143_s12, 128, %s342_s3, [#allocation5]  }
 0x143   :  { %264 = dma.done.wait [#allocation5], 128  }
 0x144   :  { %265 = vsyncadd [#allocation5], 4294967168 }
 0x145   :  { %149 = vsyncpa [#allocation4], 1 }
 0x146   :  { %150 = vsyncpa [#allocation7], 1 }
 0x147   :  { %151 = vsyncpa [#allocation5], 1 }

</bundles_post_ra>
